<compile_context>
chip_gen: v5e
topology: v5e:2x2
jax: 0.10.0
libtpu: 0.0.40
codegen_flags: <defaults>
</compile_context>

<pallas_src>
import jax
import jax.numpy as jnp
from jax.experimental import pallas as pl
from jax.experimental.pallas import tpu as pltpu

INPUT_SIZE = 5
OUTPUT_SIZE = 2

# Lane-padded VMEM per (tb, IN) f32 block = tb * 128 * 4 B  -> 4 MiB at 8192.
# Double-buffered x + out blocks ~= 16 MiB: fits the v7x 32 MiB default scoped
# VMEM limit with headroom; v5e/v6e (128 MiB physical) are comfortably fine.
MAX_ROW_TILE = 8192


def linear_kernel(x_ref, wt_ref, b_ref, o_ref):
    # x_ref : (TB, IN)   row tile of the input (last block may be ragged/padded)
    # wt_ref: (IN, OUT)  pre-transposed weight (resident across grid steps)
    # b_ref : (1, OUT)   bias (resident across grid steps)
    # o_ref : (TB, OUT)  row tile of the output (out-of-bounds rows masked out)
    x = x_ref[...]
    wt = wt_ref[...]
    # Bias folded into the accumulator init (f32 accumulate).
    acc = jnp.broadcast_to(b_ref[...].astype(jnp.float32), o_ref.shape)
    # Unrolled K-loop (K = IN = 5): pure VPU fused multiply-adds, no MXU
    # push/pop, no XLU transpose.
    for k in range(wt_ref.shape[0]):
        acc = acc + x[:, k:k + 1].astype(jnp.float32) * wt[k:k + 1, :].astype(jnp.float32)
    o_ref[...] = acc.astype(o_ref.dtype)


def _round_up(n, m):
    return ((n + m - 1) // m) * m


def _choose_row_tile(batch):
    # Aim for >= 2 grid steps on large batches (so ("parallel",) can shard rows
    # across v7x's two TensorCores) while keeping the tile a multiple of 8
    # (sublane) and capped at MAX_ROW_TILE for the lane-padded VMEM budget.
    half = _round_up(pl.cdiv(batch, 2), 8)
    return max(8, min(MAX_ROW_TILE, half))


def linear_forward(x, weight, bias):
    """y = x @ weight.T + bias, exactly nn.Linear semantics.

    x:      (B, IN)
    weight: (OUT, IN)   (PyTorch convention)
    bias:   (OUT,)
    """
    B, IN = x.shape
    OUT = weight.shape[0]

    # Free trace-time layout work in the wrapper (10-element tensor).
    wt = weight.T.reshape(IN, OUT)      # (IN, OUT): natural (M,K)x(K,N) orientation
    bias2d = bias.reshape(1, OUT)

    tb = _choose_row_tile(B)
    grid = (pl.cdiv(B, tb),)            # ragged last block handled by Pallas

    out = pl.pallas_call(
        linear_kernel,
        out_shape=jax.ShapeDtypeStruct((B, OUT), x.dtype),
        grid_spec=pltpu.PrefetchScalarGridSpec(
            num_scalar_prefetch=0,
            grid=grid,
            in_specs=[
                # x: tiled over batch rows (last block padded on read).
                pl.BlockSpec((tb, IN), lambda i: (i, 0)),
                # weight / bias: full-extent blocks, same block every step
                # (DMA'd once, stay resident in VMEM).
                pl.BlockSpec((IN, OUT), lambda i: (0, 0)),
                pl.BlockSpec((1, OUT), lambda i: (0, 0)),
            ],
            # Out-of-bounds rows of the ragged last block are masked on writeback.
            out_specs=pl.BlockSpec((tb, OUT), lambda i: (i, 0)),
        ),
        compiler_params=pltpu.CompilerParams(
            dimension_semantics=("parallel",),
        ),
    )(x, wt, bias2d)

    return out


class Model:
    """JAX/Pallas mirror of the PyTorch Model (a single nn.Linear)."""

    def __init__(self, input_size, output_size, key):
        # Mimic nn.Linear default init: U(-1/sqrt(in), 1/sqrt(in)).
        kw, kb = jax.random.split(key)
        bound = 1.0 / jnp.sqrt(jnp.float32(input_size))
        self.weight = jax.random.uniform(
            kw, (output_size, input_size), dtype=jnp.float32,
            minval=-bound, maxval=bound)
        self.bias = jax.random.uniform(
            kb, (output_size,), dtype=jnp.float32,
            minval=-bound, maxval=bound)

    def __call__(self, x):
        out = linear_forward(x, self.weight, self.bias)
        # Matches the PyTorch forward's print (note: fires at trace time if jitted).
        print('\tIn Model: input size', tuple(x.shape),
              'output size', tuple(out.shape))
        return out


if __name__ == "__main__":
    key = jax.random.PRNGKey(0)
    k_param, k_in1, k_in2 = jax.random.split(key, 3)

    model = Model(INPUT_SIZE, OUTPUT_SIZE, k_param)

    # Small example consistent with the module's forward.
    batch = 8
    x = jax.random.normal(k_in1, (batch, INPUT_SIZE), dtype=jnp.float32)
    out = jax.block_until_ready(model(x))
    ref = x @ model.weight.T + model.bias
    assert out.shape == (batch, OUTPUT_SIZE)
    assert jnp.allclose(out, ref, atol=1e-5, rtol=1e-5)

    # Exercise the ragged-last-block path (non-multiple-of-8 batch, no pad/slice).
    batch2 = 10
    x2 = jax.random.normal(k_in2, (batch2, INPUT_SIZE), dtype=jnp.float32)
    out2 = jax.block_until_ready(model(x2))
    ref2 = x2 @ model.weight.T + model.bias
    assert out2.shape == (batch2, OUTPUT_SIZE)
    assert jnp.allclose(out2, ref2, atol=1e-5, rtol=1e-5)

    print("KERNEL_OK")
</pallas_src>

<mosaic_0001>
module attributes {stable_mosaic.version = 11 : i64} {
  func.func @linear_kernel(%arg0: i32, %arg1: memref<8x5xf32, #tpu.memory_space<vmem>>, %arg2: memref<5x2xf32, #tpu.memory_space<vmem>>, %arg3: memref<1x2xf32, #tpu.memory_space<vmem>>, %arg4: memref<8x2xf32, #tpu.memory_space<vmem>>) attributes {dimension_semantics = [#tpu.dimension_semantics<parallel>], iteration_bounds = array<i64: 1>, scalar_prefetch = 0 : i64, scratch_operands = 0 : i64, tpu.core_type = #tpu.core_type<tc>, window_params = [{transform_indices = @transform_0, window_bounds = array<i64: 8, 5>}, {pipeline_mode = #tpu.pipeline_mode<synchronous>, transform_indices = @transform_1, window_bounds = array<i64: 5, 2>}, {pipeline_mode = #tpu.pipeline_mode<synchronous>, transform_indices = @transform_2, window_bounds = array<i64: 1, 2>}, {transform_indices = @transform_3, window_bounds = array<i64: 8, 2>}]} {
    %c0 = arith.constant 0 : index
    %c0_0 = arith.constant 0 : index
    %0 = vector.load %arg1[%c0, %c0_0] : memref<8x5xf32, #tpu.memory_space<vmem>>, vector<8x5xf32>
    %c0_1 = arith.constant 0 : index
    %c0_2 = arith.constant 0 : index
    %1 = vector.load %arg2[%c0_1, %c0_2] : memref<5x2xf32, #tpu.memory_space<vmem>>, vector<5x2xf32>
    %c0_3 = arith.constant 0 : index
    %c0_4 = arith.constant 0 : index
    %2 = vector.load %arg3[%c0_3, %c0_4] : memref<1x2xf32, #tpu.memory_space<vmem>>, vector<1x2xf32>
    %3 = vector.shape_cast %2 : vector<1x2xf32> to vector<1x2xf32>
    %4 = vector.broadcast %3 : vector<1x2xf32> to vector<8x2xf32>
    %5 = vector.extract_strided_slice %0 {offsets = [0, 0], sizes = [8, 1], strides = [1, 1]} : vector<8x5xf32> to vector<8x1xf32>
    %6 = vector.extract_strided_slice %1 {offsets = [0, 0], sizes = [1, 2], strides = [1, 1]} : vector<5x2xf32> to vector<1x2xf32>
    %7 = vector.broadcast %5 : vector<8x1xf32> to vector<8x2xf32>
    %8 = vector.broadcast %6 : vector<1x2xf32> to vector<8x2xf32>
    %9 = arith.mulf %7, %8 : vector<8x2xf32>
    %10 = arith.addf %4, %9 : vector<8x2xf32>
    %11 = vector.extract_strided_slice %0 {offsets = [0, 1], sizes = [8, 1], strides = [1, 1]} : vector<8x5xf32> to vector<8x1xf32>
    %12 = vector.extract_strided_slice %1 {offsets = [1, 0], sizes = [1, 2], strides = [1, 1]} : vector<5x2xf32> to vector<1x2xf32>
    %13 = vector.broadcast %11 : vector<8x1xf32> to vector<8x2xf32>
    %14 = vector.broadcast %12 : vector<1x2xf32> to vector<8x2xf32>
    %15 = arith.mulf %13, %14 : vector<8x2xf32>
    %16 = arith.addf %10, %15 : vector<8x2xf32>
    %17 = vector.extract_strided_slice %0 {offsets = [0, 2], sizes = [8, 1], strides = [1, 1]} : vector<8x5xf32> to vector<8x1xf32>
    %18 = vector.extract_strided_slice %1 {offsets = [2, 0], sizes = [1, 2], strides = [1, 1]} : vector<5x2xf32> to vector<1x2xf32>
    %19 = vector.broadcast %17 : vector<8x1xf32> to vector<8x2xf32>
    %20 = vector.broadcast %18 : vector<1x2xf32> to vector<8x2xf32>
    %21 = arith.mulf %19, %20 : vector<8x2xf32>
    %22 = arith.addf %16, %21 : vector<8x2xf32>
    %23 = vector.extract_strided_slice %0 {offsets = [0, 3], sizes = [8, 1], strides = [1, 1]} : vector<8x5xf32> to vector<8x1xf32>
    %24 = vector.extract_strided_slice %1 {offsets = [3, 0], sizes = [1, 2], strides = [1, 1]} : vector<5x2xf32> to vector<1x2xf32>
    %25 = vector.broadcast %23 : vector<8x1xf32> to vector<8x2xf32>
    %26 = vector.broadcast %24 : vector<1x2xf32> to vector<8x2xf32>
    %27 = arith.mulf %25, %26 : vector<8x2xf32>
    %28 = arith.addf %22, %27 : vector<8x2xf32>
    %29 = vector.extract_strided_slice %0 {offsets = [0, 4], sizes = [8, 1], strides = [1, 1]} : vector<8x5xf32> to vector<8x1xf32>
    %30 = vector.extract_strided_slice %1 {offsets = [4, 0], sizes = [1, 2], strides = [1, 1]} : vector<5x2xf32> to vector<1x2xf32>
    %31 = vector.broadcast %29 : vector<8x1xf32> to vector<8x2xf32>
    %32 = vector.broadcast %30 : vector<1x2xf32> to vector<8x2xf32>
    %33 = arith.mulf %31, %32 : vector<8x2xf32>
    %34 = arith.addf %28, %33 : vector<8x2xf32>
    %c0_5 = arith.constant 0 : index
    %c0_6 = arith.constant 0 : index
    %35 = vector.load %arg4[%c0_5, %c0_6] : memref<8x2xf32, #tpu.memory_space<vmem>>, vector<8x2xf32>
    tpu.vector_store %arg4[%c0_5, %c0_6], %34 {strides = array<i32>} : memref<8x2xf32, #tpu.memory_space<vmem>>, vector<8x2xf32>,
    return
  }
  func.func @transform_0(%arg0: i32) -> (i32, i32) {
    %c0_i32 = arith.constant 0 : i32
    %c0_i32_0 = arith.constant 0 : i32
    return %arg0, %c0_i32 : i32, i32
  }
  func.func @transform_1(%arg0: i32) -> (i32, i32) {
    %c0_i32 = arith.constant 0 : i32
    %c0_i32_0 = arith.constant 0 : i32
    %c0_i32_1 = arith.constant 0 : i32
    return %c0_i32, %c0_i32_0 : i32, i32
  }
  func.func @transform_2(%arg0: i32) -> (i32, i32) {
    %c0_i32 = arith.constant 0 : i32
    %c0_i32_0 = arith.constant 0 : i32
    %c0_i32_1 = arith.constant 0 : i32
    return %c0_i32, %c0_i32_0 : i32, i32
  }
  func.func @transform_3(%arg0: i32) -> (i32, i32) {
    %c0_i32 = arith.constant 0 : i32
    %c0_i32_0 = arith.constant 0 : i32
    return %arg0, %c0_i32 : i32, i32
  }
}

</mosaic_0001>

<bundles_post_ra>
// kernel: tpu_custom_call.1
= control target key start
LH: loop header
LB: loop body
LE: loop exit
PB: predicated region body
PF: predicated region fallthrough
CT: control target
= control target key end

     0   :  { %v74_v0 = vmov 0   ;;  %v75_v2 = vmov 2   ;;  %v76_v3 = vmov 4   ;;  %v77_v4 = vmov 1   ;;  %s111_s0 = inlined_call_operand.vmem [shape: f32[8,5], index: 0, kind: input, shape index: {}]   ;;  %s112_s2 = inlined_call_operand.vmem [shape: f32[1,2], index: 2, kind: input, shape index: {}]   ;;  %s113_s1 = inlined_call_operand.vmem [shape: f32[5,2], index: 1, kind: input, shape index: {}]   ;;  %s114_s3 = inlined_call_operand.vmem [shape: f32[8,2], index: 3, kind: output, shape index: {}]  }
   0x1   :  { %67 = vset.pattern.permute.xlu0 %v74_v0  ;;  %v14_v1 = vld [vmem:[%s111_s0] sm:$0xff]  ;;  %69 = vset.pattern.permute.xlu1 %v75_v2  ;;  %v78_v5 = vmov 3   ;;  %vm56_vm0 = vcmask 15360  }
   0x2   :  { %22 = vperm.xlu0 %67, %v14_v1   ;;  %36 = vperm.xlu1 %69, %v14_v1   ;;  %v15_v6 = vld [vmem:[%s113_s1] sm:$0x1f] }
   0x3   :  { %71 = vset.pattern.permute.xlu2 %v76_v3  ;;  %v25_v9 = vperm.slane %v15_v6, 0  ;;  %v73_v10 = vld [vmem:[%s112_s2] ss:$0 sm:$0xff]  ;;  %v32_v12 = vperm.slane %v15_v6, 1  ;;  %v39_v13 = vperm.slane %v15_v6, 2  ;;  %v46_v14 = vperm.slane %v15_v6, 3 }
   0x4   :  { %50 = vperm.xlu2 %71, %v14_v1   ;;  %v53_v19 = vperm.slane %v15_v6, 4 }
   0xa   :  { %68 = vset.pattern.permute.xlu0 %v77_v4  ;;  %70 = vset.pattern.permute.xlu1 %v78_v5 }
   0xb   :  { %29 = vperm.xlu0 %68, %v14_v1   ;;  %43 = vperm.xlu1 %70, %v14_v1  }
  0x13   :  { %72 = vset.pattern.permute.xlu0 %v76_v3 }
  0x5e   :  { %v51_v20 = vpop.permute.xlu2 %50 }
  0x5f   :  { %v54_v25 = vmul.f32 %v53_v19, %v51_v20 }
  0x74   :  { %v23_v7 = vpop.permute.xlu0 %22  ;;  %v37_v8 = vpop.permute.xlu1 %36 }
  0x75   :  { %v26_v11 = vmul.f32 %v25_v9, %v23_v7  ;;  %v40_v21 = vmul.f32 %v39_v13, %v37_v8 }
  0x77   :  { %v27_v17 = vadd.f32 %v73_v10, %v26_v11 }
  0x7d   :  { %v30_v15 = vpop.permute.xlu0 %29  ;;  %v44_v16 = vpop.permute.xlu1 %43 }
  0x7e   :  { %v33_v18 = vmul.f32 %v32_v12, %v30_v15  ;;  %v47_v23 = vmul.f32 %v46_v14, %v44_v16 }
  0x80   :  { %v34_v22 = vadd.f32 %v33_v18, %v27_v17 }
  0x82   :  { %v41_v24 = vadd.f32 %v40_v21, %v34_v22 }
  0x84   :  { %v48_v26 = vadd.f32 %v47_v23, %v41_v24 }
  0x86   :  { %v55_v27 = vadd.f32 %v54_v25, %v48_v26 }
  0x88   :  { %57 = vst.msk [vmem:[%s114_s3] sm:$0xff] %vm56_vm0, %v55_v27 }

</bundles_post_ra>
